<compile_context>
chip_gen: v6e
topology: v6e:2x2x1
jax: 0.10.0
libtpu: 0.0.40
codegen_flags: <defaults>
</compile_context>

<pallas_src>
import functools

import jax
import jax.numpy as jnp
from jax.experimental import pallas as pl
from jax.experimental.pallas import tpu as pltpu


def _round_up(x, m):
    return ((x + m - 1) // m) * m


# --------------------------------------------------------------------------- #
# kernel 1: attention + GRU step (runs once per decode step)                  #
# --------------------------------------------------------------------------- #
def _attn_gru_kernel(emb_ref, hid_ref, enc_ref, sel_ref, selt_ref,
                     wa_h_ref, wa_e_ref, ba_ref, v_ref,
                     wih_e_ref, wih_w_ref, bih_ref, bhh_ref,
                     feat_ref, hnew_ref, *, dec_hid_dim):
    emb = emb_ref[...]          # [B, Em]    f32
    h = hid_ref[...]            # [B, Dd]    f32
    enc = enc_ref[...]          # [S*B, De]  f32, row index = s*B + b (seq-major, pre-flattened)
    sel = sel_ref[...]          # [B, S*B]   f32, sel[b, s*B + b] = 1
    selt = selt_ref[...]        # [S*B, B]   f32 (= sel.T, built in the wrapper)

    # ---- Bahdanau attention --------------------------------------------------
    h_term = jnp.dot(h, wa_h_ref[...], preferred_element_type=jnp.float32)        # [B, Da]
    # broadcast h_term over S via the selector (MXU) - no [S, B, *] reshape needed
    h_term_f = jnp.dot(selt, h_term, preferred_element_type=jnp.float32)          # [S*B, Da]
    enc_term = jnp.dot(enc, wa_e_ref[...], preferred_element_type=jnp.float32)    # [S*B, Da]
    energy = jnp.tanh(h_term_f + enc_term + ba_ref[...])                          # [S*B, Da]
    score = jnp.sum(energy * v_ref[...], axis=-1, keepdims=True)                  # [S*B, 1]

    # softmax over S for each b: a single global max shift is valid (the
    # constant cancels within every b-group) and avoids regrouping; the
    # segmented sum over S is a selector matmul.  Exact division (no approx
    # reciprocal) - this is one-off work now.
    ex = jnp.exp(score - jnp.max(score, axis=0, keepdims=True))                   # [S*B, 1]
    denom = jnp.dot(sel, ex, preferred_element_type=jnp.float32)                  # [B, 1]
    weighted = jnp.dot(sel, ex * enc, preferred_element_type=jnp.float32) / denom # [B, De]

    # ---- GRU step, h_prev = 0 (self.rnn called without an initial hidden) ----
    # concat-free: [emb, weighted] @ W_ih == emb @ W_ih_e + weighted @ W_ih_w
    gi = (jnp.dot(emb, wih_e_ref[...], preferred_element_type=jnp.float32)
          + jnp.dot(weighted, wih_w_ref[...], preferred_element_type=jnp.float32)
          + bih_ref[...])                                                          # [B, 3*Dd]
    bhh = bhh_ref[...]                                                             # [1, 3*Dd]
    Dd = dec_hid_dim
    r = jax.nn.sigmoid(gi[:, :Dd] + bhh[:, :Dd])
    z = jax.nn.sigmoid(gi[:, Dd:2 * Dd] + bhh[:, Dd:2 * Dd])
    n = jnp.tanh(gi[:, 2 * Dd:] + r * bhh[:, 2 * Dd:])
    h_new = (1.0 - z) * n                                                          # [B, Dd] f32

    hnew_ref[...] = h_new        # written exactly once per decode step

    # feature vector for the output projection, in w_out's row order
    # cat([embedded, hidden, weighted]) -> one K=(Em+Dd+De) matmul in kernel 2.
    Em = emb.shape[1]
    feat_ref[:, :Em] = emb.astype(feat_ref.dtype)
    feat_ref[:, Em:Em + Dd] = h_new.astype(feat_ref.dtype)
    feat_ref[:, Em + Dd:] = weighted.astype(feat_ref.dtype)


# --------------------------------------------------------------------------- #
# kernel 2: vocab-tiled output projection                                     #
# --------------------------------------------------------------------------- #
def _proj_kernel(feat_ref, wout_ref, bout_ref, pred_ref):
    # single K = Em+Dd+De matmul per lane-dense vocab tile (bf16 in, f32 acc).
    pred_ref[...] = (jnp.dot(feat_ref[...], wout_ref[...],
                             preferred_element_type=jnp.float32)
                     + bout_ref[...])


def prepare_kernel_params(params, *, tile_v=4096):
    """One-time conversion of f32 PyTorch-layout params into kernel layout.

    w_out stays a single merged [Em+Dd+De, v_pad] bf16 slab (vocab zero-padded
    to a multiple of the lane-dense tile, tile forced to a multiple of 128);
    w_ih is split into its `embedded` / `weighted` row blocks so the GRU input
    concat becomes two matmuls.  The small attention / GRU weights stay f32
    (they run once per step in kernel 1, so bf16 would only cost accuracy).
    Feature dims (Em/Dd/De) are deliberately NOT padded to 128 - that would 4x
    the w_out HBM stream, which is the memory-bound part of this step.
    Use tile_v in 2048-8192 for a real vocabulary (raise
    CompilerParams(vmem_limit_bytes=...) if you go far beyond that)."""
    Em = params['embedding'].shape[1]
    V = params['w_out'].shape[1]

    tile_v = _round_up(tile_v, 128)                 # lane-dense tiles only
    tile_v = min(tile_v, _round_up(V, 128))
    v_pad = _round_up(V, tile_v)
    w_out = jnp.pad(params['w_out'], ((0, 0), (0, v_pad - V)))
    b_out = jnp.pad(params['b_out'], ((0, 0), (0, v_pad - V)))

    f32 = lambda x: x.astype(jnp.float32)
    return {
        'embedding': f32(params['embedding']),
        'wa_h': f32(params['wa_h']),
        'wa_e': f32(params['wa_e']),
        'b_attn': f32(params['b_attn']),
        'v_attn': f32(params['v_attn']),
        'w_ih_e': f32(params['w_ih'][:Em]),         # rows for `embedded`
        'w_ih_w': f32(params['w_ih'][Em:]),         # rows for `weighted`
        'b_ih': f32(params['b_ih']),
        'b_hh': f32(params['b_hh']),
        'w_out': w_out.astype(jnp.bfloat16),        # merged slab, bf16 weight stream
        'b_out': f32(b_out),
        'tile_v': tile_v,
        'v_pad': v_pad,
        'output_dim': V,
    }


def decoder_with_attention(input_ids, hidden, encoder_outputs, kp):
    """input_ids: [B] int32, hidden: [B, Dd], encoder_outputs: [S, B, De].
    Returns (prediction [B, V], hidden [1, B, Dd]) like the PyTorch module."""
    B = input_ids.shape[0]
    S, _, De = encoder_outputs.shape
    Dd = hidden.shape[1]
    Em = kp['embedding'].shape[1]
    F = Em + Dd + De
    V, v_pad, tile_v = kp['output_dim'], kp['v_pad'], kp['tile_v']
    n_tiles = v_pad // tile_v

    # glue: embedding lookup (dropout = identity in eval); pre-flatten the
    # encoder outputs to [S*B, De] once in HBM (no in-kernel relayout).
    embedded = kp['embedding'][input_ids]                                   # [B, Em] f32
    enc_flat = encoder_outputs.astype(jnp.float32).reshape(S * B, De)       # [S*B, De]
    hidden = hidden.astype(jnp.float32)

    # 0/1 selector: sel[b, s*B + b] = 1.  Lets the per-b softmax reductions and
    # the h_term broadcast run as tiny MXU matmuls inside kernel 1.
    sel = (jnp.arange(S * B)[None, :] % B
           == jnp.arange(B)[:, None]).astype(jnp.float32)                   # [B, S*B]

    # ---- kernel 1: attention + GRU (one-off, everything VMEM-resident) -------
    feat, h_new = pl.pallas_call(
        functools.partial(_attn_gru_kernel, dec_hid_dim=Dd),
        out_shape=(jax.ShapeDtypeStruct((B, F), jnp.bfloat16),   # [emb|h_new|weighted]
                   jax.ShapeDtypeStruct((B, Dd), jnp.float32)),
    )(embedded, hidden, enc_flat, sel, sel.T,
      kp['wa_h'], kp['wa_e'], kp['b_attn'], kp['v_attn'],
      kp['w_ih_e'], kp['w_ih_w'], kp['b_ih'], kp['b_hh'])

    # ---- kernel 2: vocab-tiled projection -------------------------------------
    # feat stays VMEM-resident (constant index map); w_out / b_out stream
    # through auto double-buffered lane-dense blocks.  The grid axis is
    # "parallel" so v7x can shard vocab tiles across both TensorCores.
    # (pipeline_mode=pl.Buffered(3) on the w_out spec is a further low-single-
    # digit % option once tile sizes are tuned; omitted here.)
    pred = pl.pallas_call(
        _proj_kernel,
        grid=(n_tiles,),
        out_shape=jax.ShapeDtypeStruct((B, v_pad), jnp.float32),
        in_specs=[
            pl.BlockSpec((B, F), lambda j: (0, 0)),          # feature vector (resident)
            pl.BlockSpec((F, tile_v), lambda j: (0, j)),     # w_out tile (streamed)
            pl.BlockSpec((1, tile_v), lambda j: (0, j)),     # b_out tile
        ],
        out_specs=pl.BlockSpec((B, tile_v), lambda j: (0, j)),
        compiler_params=pltpu.CompilerParams(
            dimension_semantics=("parallel",)),
    )(feat, kp['w_out'], kp['b_out'])

    # TODO(synk): fuse multiple decode steps / beams into one projection call so
    # the matmul M dimension is >= 128 and w_out stays VMEM-resident across
    # tokens - that is the order-of-magnitude lever for generation throughput.
    pred = pred[:, :V]
    # PyTorch returns hidden with the leading num_layers dim of size 1.
    return pred, h_new[None, :, :]


def _reference(input_ids, hidden, encoder_outputs, params):
    """Pure-JAX f32 mirror of the PyTorch forward (for correctness check)."""
    emb = params['embedding'][input_ids]
    enc = jnp.transpose(encoder_outputs, (1, 0, 2))
    h_term = hidden @ params['wa_h']
    enc_term = jnp.einsum('bsd,da->bsa', enc, params['wa_e'])
    energy = jnp.tanh(h_term[:, None, :] + enc_term + params['b_attn'][None])
    score = jnp.sum(energy * params['v_attn'][None], axis=-1)
    attn = jax.nn.softmax(score, axis=1)
    weighted = jnp.einsum('bs,bsd->bd', attn, enc)
    x = jnp.concatenate([emb, weighted], axis=1)
    gi = x @ params['w_ih'] + params['b_ih']
    Dd = hidden.shape[1]
    bhh = params['b_hh']
    r = jax.nn.sigmoid(gi[:, :Dd] + bhh[:, :Dd])
    z = jax.nn.sigmoid(gi[:, Dd:2 * Dd] + bhh[:, Dd:2 * Dd])
    n = jnp.tanh(gi[:, 2 * Dd:] + r * bhh[:, 2 * Dd:])
    h_new = (1.0 - z) * n
    feat = jnp.concatenate([emb, h_new, weighted], axis=1)
    pred = feat @ params['w_out'] + params['b_out']
    return pred, h_new[None]


def make_params(key, *, output_dim, emb_dim, enc_hid_dim, dec_hid_dim):
    ks = jax.random.split(key, 10)
    attn_dim = dec_hid_dim
    s = 0.1
    return {
        # nn.Embedding(output_dim, emb_dim)
        'embedding': s * jax.random.normal(ks[0], (output_dim, emb_dim), jnp.float32),
        # attention: Linear(enc_hid+dec_hid, attn_dim) split into hidden / enc parts
        'wa_h': s * jax.random.normal(ks[1], (dec_hid_dim, attn_dim), jnp.float32),
        'wa_e': s * jax.random.normal(ks[2], (enc_hid_dim, attn_dim), jnp.float32),
        'b_attn': s * jax.random.normal(ks[3], (1, attn_dim), jnp.float32),
        # attention v: Linear(attn_dim, 1, bias=False)
        'v_attn': s * jax.random.normal(ks[4], (1, attn_dim), jnp.float32),
        # nn.GRU(enc_hid+emb, dec_hid): weight_ih [3*Dd, Em+De] stored transposed
        'w_ih': s * jax.random.normal(ks[5], (emb_dim + enc_hid_dim, 3 * dec_hid_dim), jnp.float32),
        'b_ih': s * jax.random.normal(ks[6], (1, 3 * dec_hid_dim), jnp.float32),
        'b_hh': s * jax.random.normal(ks[7], (1, 3 * dec_hid_dim), jnp.float32),
        # nn.Linear(emb+dec_hid+enc_hid, output_dim), stored transposed,
        # rows ordered to match cat([embedded, hidden, weighted])
        'w_out': s * jax.random.normal(ks[8], (emb_dim + dec_hid_dim + enc_hid_dim, output_dim), jnp.float32),
        'b_out': s * jax.random.normal(ks[9], (1, output_dim), jnp.float32),
    }


if __name__ == "__main__":
    B, S = 4, 8
    output_dim, emb_dim, enc_hid_dim, dec_hid_dim = 256, 32, 32, 32

    key = jax.random.PRNGKey(0)
    k_in, k_h, k_enc, k_p = jax.random.split(key, 4)

    input_ids = jax.random.randint(k_in, (B,), 0, output_dim, dtype=jnp.int32)
    hidden = jax.random.normal(k_h, (B, dec_hid_dim), jnp.float32)
    encoder_outputs = jax.random.normal(k_enc, (S, B, enc_hid_dim), jnp.float32)
    params = make_params(k_p, output_dim=output_dim, emb_dim=emb_dim,
                         enc_hid_dim=enc_hid_dim, dec_hid_dim=dec_hid_dim)

    # tile_v=128 exercises the vocab-tiled grid even at this toy vocab;
    # the default (4096) / 2048-8192 is the right range for a real vocabulary.
    kparams = prepare_kernel_params(params, tile_v=128)

    pred, h_new = decoder_with_attention(input_ids, hidden, encoder_outputs, kparams)
    jax.block_until_ready((pred, h_new))

    pred_ref, h_ref = _reference(input_ids, hidden, encoder_outputs, params)
    assert pred.shape == (B, output_dim) and h_new.shape == (1, B, dec_hid_dim)
    # bf16 feature / w_out in the projection -> slightly looser tolerance.
    assert jnp.allclose(pred, pred_ref, atol=2e-2, rtol=2e-2), \
        float(jnp.max(jnp.abs(pred - pred_ref)))
    assert jnp.allclose(h_new, h_ref, atol=2e-2, rtol=2e-2), \
        float(jnp.max(jnp.abs(h_new - h_ref)))

    print("KERNEL_OK")
</pallas_src>

<mosaic_0001>
module attributes {stable_mosaic.version = 11 : i64} {
  func.func @_attn_gru_kernel(%arg0: memref<4x32xf32, #tpu.memory_space<vmem>>, %arg1: memref<4x32xf32, #tpu.memory_space<vmem>>, %arg2: memref<32x32xf32, #tpu.memory_space<vmem>>, %arg3: memref<4x32xf32, #tpu.memory_space<vmem>>, %arg4: memref<32x4xf32, #tpu.memory_space<vmem>>, %arg5: memref<32x32xf32, #tpu.memory_space<vmem>>, %arg6: memref<32x32xf32, #tpu.memory_space<vmem>>, %arg7: memref<1x32xf32, #tpu.memory_space<vmem>>, %arg8: memref<1x32xf32, #tpu.memory_space<vmem>>, %arg9: memref<32x96xf32, #tpu.memory_space<vmem>>, %arg10: memref<32x96xf32, #tpu.memory_space<vmem>>, %arg11: memref<1x96xf32, #tpu.memory_space<vmem>>, %arg12: memref<1x96xf32, #tpu.memory_space<vmem>>, %arg13: memref<4x96xbf16, #tpu.memory_space<vmem>>, %arg14: memref<4x32xf32, #tpu.memory_space<vmem>>) attributes {dimension_semantics = [], scalar_prefetch = 0 : i64, scratch_operands = 0 : i64, tpu.core_type = #tpu.core_type<tc>} {
    %c0 = arith.constant 0 : index
    %c0_0 = arith.constant 0 : index
    %0 = vector.load %arg0[%c0, %c0_0] : memref<4x32xf32, #tpu.memory_space<vmem>>, vector<4x32xf32>
    %c0_1 = arith.constant 0 : index
    %c0_2 = arith.constant 0 : index
    %1 = vector.load %arg1[%c0_1, %c0_2] : memref<4x32xf32, #tpu.memory_space<vmem>>, vector<4x32xf32>
    %c0_3 = arith.constant 0 : index
    %c0_4 = arith.constant 0 : index
    %2 = vector.load %arg2[%c0_3, %c0_4] : memref<32x32xf32, #tpu.memory_space<vmem>>, vector<32x32xf32>
    %c0_5 = arith.constant 0 : index
    %c0_6 = arith.constant 0 : index
    %3 = vector.load %arg3[%c0_5, %c0_6] : memref<4x32xf32, #tpu.memory_space<vmem>>, vector<4x32xf32>
    %c0_7 = arith.constant 0 : index
    %c0_8 = arith.constant 0 : index
    %4 = vector.load %arg4[%c0_7, %c0_8] : memref<32x4xf32, #tpu.memory_space<vmem>>, vector<32x4xf32>
    %c0_9 = arith.constant 0 : index
    %c0_10 = arith.constant 0 : index
    %5 = vector.load %arg5[%c0_9, %c0_10] : memref<32x32xf32, #tpu.memory_space<vmem>>, vector<32x32xf32>
    %cst = arith.constant dense<0.000000e+00> : vector<4x32xf32>
    %6 = tpu.matmul %1, %5, %cst {dimension_numbers = #tpu.dot_dimension_numbers<[1], [0], [0], [1], [0, 0, 1, 1], [], []>} : vector<4x32xf32>, vector<32x32xf32>, vector<4x32xf32> -> vector<4x32xf32>
    %cst_11 = arith.constant dense<0.000000e+00> : vector<32x32xf32>
    %7 = tpu.matmul %4, %6, %cst_11 {dimension_numbers = #tpu.dot_dimension_numbers<[1], [0], [0], [1], [0, 0, 1, 1], [], []>} : vector<32x4xf32>, vector<4x32xf32>, vector<32x32xf32> -> vector<32x32xf32>
    %c0_12 = arith.constant 0 : index
    %c0_13 = arith.constant 0 : index
    %8 = vector.load %arg6[%c0_12, %c0_13] : memref<32x32xf32, #tpu.memory_space<vmem>>, vector<32x32xf32>
    %cst_14 = arith.constant dense<0.000000e+00> : vector<32x32xf32>
    %9 = tpu.matmul %2, %8, %cst_14 {dimension_numbers = #tpu.dot_dimension_numbers<[1], [0], [0], [1], [0, 0, 1, 1], [], []>} : vector<32x32xf32>, vector<32x32xf32>, vector<32x32xf32> -> vector<32x32xf32>
    %10 = arith.addf %7, %9 : vector<32x32xf32>
    %c0_15 = arith.constant 0 : index
    %c0_16 = arith.constant 0 : index
    %11 = vector.load %arg7[%c0_15, %c0_16] : memref<1x32xf32, #tpu.memory_space<vmem>>, vector<1x32xf32>
    %12 = vector.broadcast %11 : vector<1x32xf32> to vector<32x32xf32>
    %13 = arith.addf %10, %12 : vector<32x32xf32>
    %14 = math.tanh %13 : vector<32x32xf32>
    %c0_17 = arith.constant 0 : index
    %c0_18 = arith.constant 0 : index
    %15 = vector.load %arg8[%c0_17, %c0_18] : memref<1x32xf32, #tpu.memory_space<vmem>>, vector<1x32xf32>
    %16 = vector.broadcast %15 : vector<1x32xf32> to vector<32x32xf32>
    %17 = arith.mulf %14, %16 : vector<32x32xf32>
    %cst_19 = arith.constant dense<0.000000e+00> : vector<32xf32>
    %18 = vector.multi_reduction <add>, %17, %cst_19 [1] : vector<32x32xf32> to vector<32xf32>
    %19 = vector.shape_cast %18 : vector<32xf32> to vector<32x1xf32>
    %cst_20 = arith.constant dense<0xFF800000> : vector<1xf32>
    %20 = vector.multi_reduction <maximumf>, %19, %cst_20 [0] : vector<32x1xf32> to vector<1xf32>
    %21 = vector.shape_cast %20 : vector<1xf32> to vector<1x1xf32>
    %22 = vector.broadcast %21 : vector<1x1xf32> to vector<32x1xf32>
    %23 = arith.subf %19, %22 : vector<32x1xf32>
    %24 = math.exp %23 : vector<32x1xf32>
    %cst_21 = arith.constant dense<0.000000e+00> : vector<4x1xf32>
    %25 = tpu.matmul %3, %24, %cst_21 {dimension_numbers = #tpu.dot_dimension_numbers<[1], [0], [0], [1], [0, 0, 1, 1], [], []>} : vector<4x32xf32>, vector<32x1xf32>, vector<4x1xf32> -> vector<4x1xf32>
    %26 = vector.broadcast %24 : vector<32x1xf32> to vector<32x32xf32>
    %27 = arith.mulf %26, %2 : vector<32x32xf32>
    %cst_22 = arith.constant dense<0.000000e+00> : vector<4x32xf32>
    %28 = tpu.matmul %3, %27, %cst_22 {dimension_numbers = #tpu.dot_dimension_numbers<[1], [0], [0], [1], [0, 0, 1, 1], [], []>} : vector<4x32xf32>, vector<32x32xf32>, vector<4x32xf32> -> vector<4x32xf32>
    %29 = vector.broadcast %25 : vector<4x1xf32> to vector<4x32xf32>
    %30 = arith.divf %28, %29 : vector<4x32xf32>
    %c0_23 = arith.constant 0 : index
    %c0_24 = arith.constant 0 : index
    %31 = vector.load %arg9[%c0_23, %c0_24] : memref<32x96xf32, #tpu.memory_space<vmem>>, vector<32x96xf32>
    %cst_25 = arith.constant dense<0.000000e+00> : vector<4x96xf32>
    %32 = tpu.matmul %0, %31, %cst_25 {dimension_numbers = #tpu.dot_dimension_numbers<[1], [0], [0], [1], [0, 0, 1, 1], [], []>} : vector<4x32xf32>, vector<32x96xf32>, vector<4x96xf32> -> vector<4x96xf32>
    %c0_26 = arith.constant 0 : index
    %c0_27 = arith.constant 0 : index
    %33 = vector.load %arg10[%c0_26, %c0_27] : memref<32x96xf32, #tpu.memory_space<vmem>>, vector<32x96xf32>
    %cst_28 = arith.constant dense<0.000000e+00> : vector<4x96xf32>
    %34 = tpu.matmul %30, %33, %cst_28 {dimension_numbers = #tpu.dot_dimension_numbers<[1], [0], [0], [1], [0, 0, 1, 1], [], []>} : vector<4x32xf32>, vector<32x96xf32>, vector<4x96xf32> -> vector<4x96xf32>
    %35 = arith.addf %32, %34 : vector<4x96xf32>
    %c0_29 = arith.constant 0 : index
    %c0_30 = arith.constant 0 : index
    %36 = vector.load %arg11[%c0_29, %c0_30] : memref<1x96xf32, #tpu.memory_space<vmem>>, vector<1x96xf32>
    %37 = vector.broadcast %36 : vector<1x96xf32> to vector<4x96xf32>
    %38 = arith.addf %35, %37 : vector<4x96xf32>
    %c0_31 = arith.constant 0 : index
    %c0_32 = arith.constant 0 : index
    %39 = vector.load %arg12[%c0_31, %c0_32] : memref<1x96xf32, #tpu.memory_space<vmem>>, vector<1x96xf32>
    %40 = vector.extract_strided_slice %38 {offsets = [0, 0], sizes = [4, 32], strides = [1, 1]} : vector<4x96xf32> to vector<4x32xf32>
    %41 = vector.extract_strided_slice %39 {offsets = [0, 0], sizes = [1, 32], strides = [1, 1]} : vector<1x96xf32> to vector<1x32xf32>
    %42 = vector.broadcast %41 : vector<1x32xf32> to vector<4x32xf32>
    %43 = arith.addf %40, %42 : vector<4x32xf32>
    %44 = arith.negf %43 : vector<4x32xf32>
    %45 = math.exp %44 : vector<4x32xf32>
    %cst_33 = arith.constant 1.000000e+00 : f32
    %46 = vector.broadcast %cst_33 : f32 to vector<4x32xf32>
    %47 = arith.addf %46, %45 : vector<4x32xf32>
    %48 = arith.divf %46, %47 : vector<4x32xf32>
    %49 = vector.extract_strided_slice %38 {offsets = [0, 32], sizes = [4, 32], strides = [1, 1]} : vector<4x96xf32> to vector<4x32xf32>
    %50 = vector.extract_strided_slice %39 {offsets = [0, 32], sizes = [1, 32], strides = [1, 1]} : vector<1x96xf32> to vector<1x32xf32>
    %51 = vector.broadcast %50 : vector<1x32xf32> to vector<4x32xf32>
    %52 = arith.addf %49, %51 : vector<4x32xf32>
    %53 = arith.negf %52 : vector<4x32xf32>
    %54 = math.exp %53 : vector<4x32xf32>
    %cst_34 = arith.constant 1.000000e+00 : f32
    %55 = vector.broadcast %cst_34 : f32 to vector<4x32xf32>
    %56 = arith.addf %55, %54 : vector<4x32xf32>
    %57 = arith.divf %55, %56 : vector<4x32xf32>
    %58 = vector.extract_strided_slice %38 {offsets = [0, 64], sizes = [4, 32], strides = [1, 1]} : vector<4x96xf32> to vector<4x32xf32>
    %59 = vector.extract_strided_slice %39 {offsets = [0, 64], sizes = [1, 32], strides = [1, 1]} : vector<1x96xf32> to vector<1x32xf32>
    %60 = vector.broadcast %59 : vector<1x32xf32> to vector<4x32xf32>
    %61 = arith.mulf %48, %60 : vector<4x32xf32>
    %62 = arith.addf %58, %61 : vector<4x32xf32>
    %63 = math.tanh %62 : vector<4x32xf32>
    %cst_35 = arith.constant 1.000000e+00 : f32
    %64 = vector.broadcast %cst_35 : f32 to vector<4x32xf32>
    %65 = arith.subf %64, %57 : vector<4x32xf32>
    %66 = arith.mulf %65, %63 : vector<4x32xf32>
    %c0_36 = arith.constant 0 : index
    %c0_37 = arith.constant 0 : index
    %67 = vector.load %arg14[%c0_36, %c0_37] : memref<4x32xf32, #tpu.memory_space<vmem>>, vector<4x32xf32>
    tpu.vector_store %arg14[%c0_36, %c0_37], %66 {strides = array<i32>} : memref<4x32xf32, #tpu.memory_space<vmem>>, vector<4x32xf32>,
    %68 = arith.truncf %0 : vector<4x32xf32> to vector<4x32xbf16>
    %c0_38 = arith.constant 0 : index
    %c0_39 = arith.constant 0 : index
    %69 = vector.load %arg13[%c0_38, %c0_39] : memref<4x96xbf16, #tpu.memory_space<vmem>>, vector<4x32xbf16>
    tpu.vector_store %arg13[%c0_38, %c0_39], %68 {strides = array<i32>} : memref<4x96xbf16, #tpu.memory_space<vmem>>, vector<4x32xbf16>,
    %70 = arith.truncf %66 : vector<4x32xf32> to vector<4x32xbf16>
    %c0_40 = arith.constant 0 : index
    %c32 = arith.constant 32 : index
    %71 = vector.load %arg13[%c0_40, %c32] : memref<4x96xbf16, #tpu.memory_space<vmem>>, vector<4x32xbf16>
    tpu.vector_store %arg13[%c0_40, %c32], %70 {strides = array<i32>} : memref<4x96xbf16, #tpu.memory_space<vmem>>, vector<4x32xbf16>,
    %72 = arith.truncf %30 : vector<4x32xf32> to vector<4x32xbf16>
    %c0_41 = arith.constant 0 : index
    %c64 = arith.constant 64 : index
    %73 = vector.load %arg13[%c0_41, %c64] : memref<4x96xbf16, #tpu.memory_space<vmem>>, vector<4x32xbf16>
    tpu.vector_store %arg13[%c0_41, %c64], %72 {strides = array<i32>} : memref<4x96xbf16, #tpu.memory_space<vmem>>, vector<4x32xbf16>,
    return
  }
}

</mosaic_0001>

<bundles_post_ra>
// kernel: tpu_custom_call.1
= control target key start
LH: loop header
LB: loop body
LE: loop exit
PB: predicated region body
PF: predicated region fallthrough
CT: control target
= control target key end

     0   :  { %20 = vsyncpa [#allocation3], 0  ;;  %s1460_s0 = inlined_call_operand.vmem [shape: f32[4,32], index: 0, kind: input, shape index: {}]   ;;  %s1461_s1 = inlined_call_operand.hbm [shape: f32[4,32], index: 1, kind: input, shape index: {}]   ;;  %s1462_s2 = inlined_call_operand.vmem [shape: f32[32,32], index: 2, kind: input, shape index: {}]   ;;  %s1463_s3 = inlined_call_operand.hbm [shape: f32[4,32], index: 3, kind: input, shape index: {}]   ;;  %s1464_s4 = inlined_call_operand.vmem [shape: f32[32,4], index: 4, kind: input, shape index: {}]   ;;  %s1465_s5 = inlined_call_operand.hbm [shape: f32[32,32], index: 5, kind: input, shape index: {}]   ;;  %s1466_s6 = inlined_call_operand.hbm [shape: f32[32,32], index: 6, kind: input, shape index: {}]   ;;  %s1467_s7 = inlined_call_operand.vmem [shape: f32[1,32], index: 7, kind: input, shape index: {}]   ;;  %s1468_s8 = inlined_call_operand.vmem [shape: f32[1,32], index: 8, kind: input, shape index: {}]   ;;  %s1469_s9 = inlined_call_operand.hbm [shape: f32[32,96], index: 9, kind: input, shape index: {}]   ;;  %s1470_s10 = inlined_call_operand.hbm [shape: f32[32,96], index: 10, kind: input, shape index: {}]   ;;  %s1471_s11 = inlined_call_operand.vmem [shape: f32[1,96], index: 11, kind: input, shape index: {}]   ;;  %s1472_s12 = inlined_call_operand.vmem [shape: f32[1,96], index: 12, kind: input, shape index: {}]   ;;  %s1473_s13 = inlined_call_operand.hbm [shape: bf16[4,96], index: 13, kind: output, shape index: {0}]   ;;  %s1474_s14 = inlined_call_operand.hbm [shape: f32[4,32], index: 14, kind: output, shape index: {1}]  }
   0x1   :  { %21 = vsyncpa [#allocation6], 0 }
   0x2   :  { %22 = vsyncpa [#allocation9], 0 }
   0x3   :  { %23 = vsyncpa [#allocation12], 0 }
   0x4   :  { %24 = vsyncpa [#allocation4], 0 }
   0x5   :  { %25 = vsyncpa [#allocation15], 0  ;;  %s1228_s29 = smov [#allocation5]  }
   0x6   :  { %s46_s30 = sshll.u32 %s1228_s29, 4  ;;  %s47_s30 = int_to_ptr.vmem [resolvable:$true] %s46_s30 }
   0x7   :  { %s1064_s15 = scalar_lea.vmem %s47_s30, 64  ;;  %p1069_p1 = scmp.lt.s32.totalorder %s47_s30, %s47_s30 }
   0x8   :  { %p1065_p0 = scmp.ne.s32.totalorder %s47_s30, %s1064_s15  ;;  %p1070_p2 = scmp.lt.s32.totalorder %s1064_s15, %s1064_s15 }
   0xa   :  { %p1071_p3 = por %p1070_p2, %p1069_p1 }
   0xc   :  { %p1072_p4 = pnand %p1071_p3, %p1065_p0 }
   0xe   :  { %1075 = shalt.err (!%p1072_p4)
}
   0xf   :  { %49 = dma.hbm_to_vmem [thread:$0]  %s1463_s3, 64, %s47_s30, [#allocation6]  }
  0x10   :  { %s1229_s18 = smov [#allocation8]   ;;  %s1230_s20 = smov [#allocation2]  }
  0x11   :  { %s69_s19 = sshll.u32 %s1229_s18, 4  ;;  %s34_s21 = sshll.u32 %s1230_s20, 4  ;;  %s70_s19 = int_to_ptr.vmem [resolvable:$true] %s69_s19  ;;  %s35_s21 = int_to_ptr.vmem [resolvable:$true] %s34_s21 }
  0x12   :  { %s1084_s22 = scalar_lea.vmem %s70_s19, 512  ;;  %p1089_p6 = scmp.lt.s32.totalorder %s70_s19, %s70_s19 }
  0x13   :  { %p1085_p5 = scmp.ne.s32.totalorder %s70_s19, %s1084_s22  ;;  %p1090_p7 = scmp.lt.s32.totalorder %s1084_s22, %s1084_s22 }
  0x15   :  { %p1091_p8 = por %p1090_p7, %p1089_p6 }
  0x17   :  { %p1092_p9 = pnand %p1091_p8, %p1085_p5 }
  0x19   :  { %1095 = shalt.err (!%p1092_p9)
}
  0x1a   :  { %s1231_s23 = smov 128   ;;  %s1232_s24 = smov 8  }
  0x1b   :  { %75 = dma.hbm_to_vmem [thread:$0]  %s1466_s6, 512, %s70_s19, [#allocation9], %s1231_s23, %s1231_s23, %s1232_s24  }
  0x1c   :  { %s1104_s3 = scalar_lea.vmem %s35_s21, 64  ;;  %p1109_p11 = scmp.lt.s32.totalorder %s35_s21, %s35_s21 }
  0x1d   :  { %p1105_p10 = scmp.ne.s32.totalorder %s35_s21, %s1104_s3  ;;  %p1110_p12 = scmp.lt.s32.totalorder %s1104_s3, %s1104_s3 }
  0x1f   :  { %p1111_p13 = por %p1110_p12, %p1109_p11 }
  0x21   :  { %p1112_p0 = pnand %p1111_p13, %p1105_p10 }
  0x23   :  { %1115 = shalt.err (!%p1112_p0)
}
  0x24   :  { %37 = dma.hbm_to_vmem [thread:$0]  %s1461_s1, 64, %s35_s21, [#allocation3]  }
  0x25   :  { %s1233_s29 = smov [#allocation7]   ;;  %s1234_s15 = smov [#allocation10]  }
  0x26   :  { %s57_s30 = sshll.u32 %s1233_s29, 4  ;;  %s85_s16 = sshll.u32 %s1234_s15, 4  ;;  %s58_s30 = int_to_ptr.vmem [resolvable:$true] %s57_s30  ;;  %s86_s16 = int_to_ptr.vmem [resolvable:$true] %s85_s16 }
  0x27   :  { %s1124_s17 = scalar_lea.vmem %s58_s30, 512  ;;  %p1129_p2 = scmp.lt.s32.totalorder %s58_s30, %s58_s30 }
  0x28   :  { %p1125_p1 = scmp.ne.s32.totalorder %s58_s30, %s1124_s17  ;;  %p1130_p3 = scmp.lt.s32.totalorder %s1124_s17, %s1124_s17 }
  0x2a   :  { %p1131_p4 = por %p1130_p3, %p1129_p2 }
  0x2c   :  { %p1132_p5 = pnand %p1131_p4, %p1125_p1 }
  0x2e   :  { %1135 = shalt.err (!%p1132_p5)
}
  0x2f   :  { %63 = dma.hbm_to_vmem [thread:$0]  %s1465_s5, 512, %s58_s30, [#allocation6], %s1231_s23, %s1231_s23, %s1232_s24  }
  0x30   :  { %s1144_s1 = scalar_lea.vmem %s86_s16, 512  ;;  %p1149_p7 = scmp.lt.s32.totalorder %s86_s16, %s86_s16 }
  0x31   :  { %p1145_p6 = scmp.ne.s32.totalorder %s86_s16, %s1144_s1  ;;  %p1150_p8 = scmp.lt.s32.totalorder %s1144_s1, %s1144_s1 }
  0x33   :  { %p1151_p9 = por %p1150_p8, %p1149_p7 }
  0x35   :  { %p1152_p10 = pnand %p1151_p9, %p1145_p6 }
  0x37   :  { %1155 = shalt.err (!%p1152_p10)
}
  0x38   :  { %91 = dma.hbm_to_vmem [thread:$0]  %s1469_s9, 512, %s86_s16, [#allocation9], %s1231_s23, %s1231_s23, %s1232_s24  }
  0x39   :  { %s1235_s21 = smov [#allocation11]  }
  0x3a   :  { %s97_s22 = sshll.u32 %s1235_s21, 4  ;;  %s98_s22 = int_to_ptr.vmem [resolvable:$true] %s97_s22 }
  0x3b   :  { %s1164_s25 = scalar_lea.vmem %s98_s22, 512  ;;  %p1169_p12 = scmp.lt.s32.totalorder %s98_s22, %s98_s22 }
  0x3c   :  { %p1165_p11 = scmp.ne.s32.totalorder %s98_s22, %s1164_s25  ;;  %p1170_p13 = scmp.lt.s32.totalorder %s1164_s25, %s1164_s25 }
  0x3e   :  { %p1171_p0 = por %p1170_p13, %p1169_p12 }
  0x40   :  { %p1172_p1 = pnand %p1171_p0, %p1165_p11 }
  0x42   :  { %1175 = shalt.err (!%p1172_p1)
}
  0x43   :  { %103 = dma.hbm_to_vmem [thread:$0]  %s1470_s10, 512, %s98_s22, [#allocation12], %s1231_s23, %s1231_s23, %s1232_s24  }
  0x44   :  { %1216 = dma.done.wait [#allocation3], 64  }
  0x45   :  { %1217 = vsyncadd [#allocation3], 4294967232 }
  0x46   :  { %1218 = dma.done.wait [#allocation6], 576  }
  0x47   :  { %1219 = vsyncadd [#allocation6], 4294966720 }
  0x48   :  { %1220 = dma.done.wait [#allocation9], 1024  }
  0x49   :  { %1221 = vsyncadd [#allocation9], 4294966272 }
  0x4a   :  { %1222 = dma.done.wait [#allocation12], 512  }
  0x4b   :  { %1223 = vsyncadd [#allocation12], 4294966784  ;;  %v1236_v0 = vmov 0.0   ;;  %vm1237_vm0 = vmmov 0   ;;  %v140_v1 = vld [vmem:[#allocation7 + $0x18] sm:$0xff]  ;;  %v139_v2 = vld [vmem:[#allocation7 + $0x10] sm:$0xff] }
  0x4c   :  { %938 = vmatprep.subr.mxu0 %v1236_v0  ;;  %946 = vmatprep.mubr.msk.f32.mxu0 %vm1237_vm0, %v1236_v0  ;;  %v218_v3 = vld [vmem:[#allocation8 + $0x18] sm:$0xff]  ;;  %v138_v4 = vld [vmem:[#allocation7 + $0x8] sm:$0xff]  ;;  %v217_v5 = vld [vmem:[#allocation8 + $0x10] sm:$0xff]  ;;  %vm141_vm1 = vcmask 261120   ;;  %vm316_vm2 = vcmask 31744   ;;  %vm329_vm3 = vcmask 1043456  }
  0x4d   :  { %939 = vmatpush3.msra.mxu0 %v140_v1  ;;  %949 = vmatprep.subr.mxu1 %v218_v3  ;;  %v216_v6 = vld [vmem:[#allocation8 + $0x8] sm:$0xff]  ;;  %v137_v7 = vld [vmem:[#allocation7] sm:$0xff]  ;;  %v127_v8 = vld [vmem:[#allocation2] sm:$0xf]  ;;  %v1238_v50 = vmov 0   ;;  %s1239_s5 = smov 64  }
  0x4e   :  { %940 = vmatprep.subr.mxu0 %v1236_v0  ;;  %950 = vmatpush3.msra.mxu1 %v218_v3  ;;  %v215_v9 = vld [vmem:[#allocation8] sm:$0xff]  ;;  %v1359_v10 = vld [vmem:[%s1462_s2] sm:$0xff]  ;;  %v1378_v13 = vld [vmem:[%s1462_s2 + $0x10] sm:$0xff]  ;;  %vm830_vm4 = vcmask 254976   ;;  %vm833_vm5 = vcmask 517376   ;;  %vm827_vm6 = vcmask 257024  }
  0x4f   :  { %941 = vmatpush3.msra.mxu0 %v139_v2  ;;  %951 = vmatprep.subr.mxu1 %v217_v5  ;;  %v1366_v11 = vld [vmem:[%s1462_s2 + $0x8] sm:$0xff]  ;;  %v133_v12 = vld [vmem:[%s1464_s4] sm:$0xff]  ;;  %v1385_v14 = vld [vmem:[%s1462_s2 + $0x18] sm:$0xff]  ;;  %s1243_s10 = smov [#allocation13]   ;;  %vm847_vm7 = vcmask 779776  }
  0x50   :  { %942 = vmatprep.subr.mxu0 %v1236_v0  ;;  %952 = vmatpush3.msra.mxu1 %v217_v5  ;;  %v134_v16 = vld [vmem:[%s1464_s4 + $0x8] sm:$0xff]  ;;  %v135_v17 = vld [vmem:[%s1464_s4 + $0x10] sm:$0xff]  ;;  %v136_v19 = vld [vmem:[%s1464_s4 + $0x18] sm:$0xff]  ;;  %s855_s23 = sshll.u32 %s1243_s10, 4  ;;  %s856_s23 = int_to_ptr.vmem [resolvable:$true] %s855_s23 }
  0x51   :  { %943 = vmatpush3.msra.mxu0 %v138_v4  ;;  %953 = vmatprep.subr.mxu1 %v216_v6  ;;  %v891_v23 = vld [vmem:[%s1467_s7] ss:$0 sm:$0xff] }
  0x52   :  { %944 = vmatprep.subr.mxu0 %v1236_v0  ;;  %954 = vmatpush3.msra.mxu1 %v216_v6  ;;  %v892_v39 = vld [vmem:[%s1468_s8] ss:$0 sm:$0xff] }
  0x53   :  { %945 = vmatpush3.msra.mxu0 %v137_v7  ;;  %955 = vmatprep.subr.mxu1 %v215_v9 }
  0x54   :  { %947 = vmatmul.mubr.msk.f32.vlgmr.msra.gmra.mxu0 %vm141_vm1, %v127_v8  ;;  %956 = vmatpush3.msra.mxu1 %v215_v9 }
  0x55   :  { %957 = vmatprep.mubr.msk.f32.mxu1 %vm141_vm1, %v1359_v10  ;;  %971 = vmatprep.subr.mxu1 %v1236_v0 }
  0x56   :  { %958 = vmatmul.mubr.msk.f32.vlgmr.msra.gmra.mxu1 %vm141_vm1, %v1366_v11  ;;  %965 = vmatprep.mubr.msk.f32.mxu0 %vm316_vm2, %v133_v12 }
  0x57   :  { %960 = vmatprep.mubr.msk.f32.mxu1 %vm141_vm1, %v1378_v13  ;;  %1031 = vset.pattern.permute.xlu0 %v1238_v50 }
  0x5a   :  { %961 = vmatmul.mubr.msk.f32.gmra.mxu1 %vm141_vm1, %v1385_v14 }
  0x5b   :  { %979 = vmatprep.mubr.msk.f32.mxu1 %vm1237_vm0, %v1236_v0 }
 0x114   :  { %v211_v15 = vpop.f32.mrf.mxu0 }
 0x115   :  { %963 = vmatprep.subr.msk.mxu0 %vm329_vm3, %v211_v15 }
 0x116   :  { %v948_v18 = vpop.f32.mrf.mxu0  ;;  %964 = vmatpush3.msk.msra.mxu0 %vm329_vm3, %v211_v15  ;;  %v959_v20 = vpop.f32.mrf.mxu1 }
 0x117   :  { %966 = vmatmul.mubr.msk.f32.vlgmr.msra.gmra.mxu0 %vm316_vm2, %v134_v16  ;;  %982 = vmatprep.subr.mxu0 %v1236_v0 }
 0x118   :  { %968 = vmatprep.mubr.msk.f32.mxu0 %vm316_vm2, %v135_v17  ;;  %v297_v21 = vpop.f32.mrf.mxu1 }
 0x11a   :  { %v962_v26 = vpop.f32.mrf.mxu1 }
 0x11b   :  { %969 = vmatmul.mubr.msk.f32.gmra.mxu0 %vm316_vm2, %v136_v19 }
 0x11c   :  { %990 = vmatprep.mubr.msk.f32.mxu0 %vm1237_vm0, %v1236_v0  ;;  %v307_v32 = vpop.f32.mrf.mxu1 }
 0x1d7   :  { %v967_v22 = vpop.f32.mrf.mxu0 }
 0x1d8   :  { %v405_v24 = vadd.f32 %v967_v22, %v959_v20  ;;  %v132_v20 = vld [vmem:[#allocation5] sm:$0xf] }
 0x1d9   :  { %v399_v25 = vpop.f32.mrf.mxu0 }
 0x1da   :  { %v426_v27 = vadd.f32 %v891_v23, %v405_v24  ;;  %v400_v28 = vadd.f32 %v399_v25, %v297_v21  ;;  %v633_v21 = vld [vmem:[#allocation10 + $0x10] sm:$0xff] }
 0x1db   :  { %v970_v29 = vpop.f32.mrf.mxu0 }
 0x1dc   :  { %v425_v30 = vadd.f32 %v891_v23, %v400_v28  ;;  %v415_v31 = vadd.f32 %v970_v29, %v962_v26  ;;  %1032 = vtanh.f32 %v426_v27  ;;  %v632_v26 = vld [vmem:[#allocation10 + $0x8] sm:$0xff]  ;;  %v631_v28 = vld [vmem:[#allocation10] sm:$0xff]  ;;  %v126_v29 = vld [vmem:[%s1460_s0] sm:$0xf] }
 0x1dd   :  { %v409_v33 = vpop.f32.mrf.mxu0  ;;  %v636_v27 = vld [vmem:[#allocation11 + $0x8] sm:$0xff]  ;;  %v829_v50 = vpack.c.bf16 %v126_v29, %v126_v29 }
 0x1de   :  { %1034 = vtanh.f32 %v425_v30  ;;  %v428_v34 = vadd.f32 %v891_v23, %v415_v31  ;;  %v410_v35 = vadd.f32 %v409_v33, %v307_v32  ;;  %v635_v30 = vld [vmem:[#allocation11] sm:$0xff]  ;;  %v898_v31 = vld [vmem:[%s1472_s12] ss:$0 sm:$0xff]  ;;  %s1242_s12 = smov [#allocation14]  }
 0x1df   :  { %831 = vst.msk [vmem:[#allocation13] sm:$0x3] %vm830_vm4, %v829_v50  ;;  %s865_s9 = sshll.u32 %s1242_s12, 4  ;;  %s866_s9 = int_to_ptr.vmem [resolvable:$true] %s865_s9 }
 0x1e0   :  { %v427_v36 = vadd.f32 %v891_v23, %v410_v35  ;;  %1036 = vtanh.f32 %v428_v34  ;;  %s1176_s24 = scalar_lea.vmem %s866_s9, 64  ;;  %p1181_p3 = scmp.lt.s32.totalorder %s866_s9, %s866_s9 }
 0x1e1   :  { %p1177_p2 = scmp.ne.s32.totalorder %s866_s9, %s1176_s24  ;;  %p1182_p4 = scmp.lt.s32.totalorder %s1176_s24, %s1176_s24 }
 0x1e2   :  { %1038 = vtanh.f32 %v427_v36 }
 0x1e3   :  { %p1183_p5 = por %p1182_p4, %p1181_p3 }
 0x1e5   :  { %p1184_p6 = pnand %p1183_p5, %p1177_p2 }
 0x1e9   :  { %v1033_v37 = vpop.eup %1032 }
 0x1ea   :  { %v441_v43 = vmul.f32 %v1033_v37, %v892_v39  ;;  %v897_v37 = vld [vmem:[%s1471_s11] ss:$0 sm:$0xff]  ;;  %s1240_s11 = smov 96  }
 0x1eb   :  { %v1035_v38 = vpop.eup %1034 }
 0x1ec   :  { %v440_v40 = vmul.f32 %v1035_v38, %v892_v39  ;;  %v447_v47 = vsel %vm141_vm1, %v441_v43, 0.0 }
 0x1ed   :  { %v1037_v41 = vpop.eup %1036 }
 0x1ee   :  { %v444_v42 = vsel %vm141_vm1, %v440_v40, 0.0  ;;  %v443_v48 = vmul.f32 %v1037_v41, %v892_v39 }
 0x1ef   :  { %v1039_v44 = vpop.eup %1038  ;;  %445 = vadd.xlane.f32.xlu0 %v444_v42 }
 0x1f0   :  { %v442_v45 = vmul.f32 %v1039_v44, %v892_v39  ;;  %v453_v49 = vsel %vm141_vm1, %v443_v48, 0.0 }
 0x1f2   :  { %v450_v46 = vsel %vm141_vm1, %v442_v45, 0.0 }
 0x1f3   :  { %451 = vadd.xlane.f32.xlu1 %v450_v46  ;;  %448 = vadd.xlane.f32.xlu0 %v447_v47 }
 0x1f7   :  { %454 = vadd.xlane.f32.xlu1 %v453_v49 }
 0x208   :  { %807 = vrot.lane.b32.xlu1 %v898_v31, %s1239_s5 }
 0x278   :  { %v446_v51 = vpop.xlane.xlu0 %445 }
 0x27c   :  { %v452_v52 = vpop.xlane.xlu1 %451  ;;  %v449_v53 = vpop.xlane.xlu0 %448 }
 0x27d   :  { %v456_v55 = vmax.f32 %v446_v51, %v449_v53 }
 0x280   :  { %v455_v54 = vpop.xlane.xlu1 %454 }
 0x281   :  { %v457_v56 = vmax.f32 %v452_v52, %v455_v54 }
 0x283   :  { %v458_v57 = vmax.f32 %v456_v55, %v457_v56 }
 0x284   :  { %v808_v45 = vpop.permute.xlu1 %807 }
 0x285   :  { %v459_v58 = vrot.slane %v458_v57, 4 }
 0x287   :  { %v460_v59 = vmax.f32 %v458_v57, %v459_v58 }
 0x289   :  { %v461_v60 = vrot.slane %v460_v59, 2 }
 0x28b   :  { %v462_v61 = vmax.f32 %v460_v59, %v461_v60 }
 0x28d   :  { %v463_v62 = vrot.slane %v462_v61, 1 }
 0x28f   :  { %v464_v63 = vmax.f32 %v462_v61, %v463_v62 }
 0x291   :  { %v467_v1 = vsub.f32 %v452_v52, %v464_v63  ;;  %v468_v2 = vsub.f32 %v455_v54, %v464_v63  ;;  %v466_v3 = vsub.f32 %v449_v53, %v464_v63  ;;  %v465_v5 = vsub.f32 %v446_v51, %v464_v63 }
 0x292   :  { %v1241_v52 = vmov 1983009808   ;;  %v840_v54 = vlaneseq }
 0x293   :  { %v473_v4 = vmul.f32 1.442695, %v467_v1  ;;  %v475_v6 = vmul.f32 1.442695, %v468_v2  ;;  %v471_v7 = vmul.f32 1.442695, %v466_v3  ;;  %v838_v53 = vunpack.c.l.s4 %v1241_v52 }
 0x294   :  { %v469_v8 = vmul.f32 1.442695, %v465_v5  ;;  %v841_v56 = vshrl.u32 %v840_v54, 7 }
 0x295   :  { %1040 = vpow2.f32 %v473_v4  ;;  %v839_v55 = vunpack.c.0.s8 %v838_v53 }
 0x296   :  { %1042 = vpow2.f32 %v475_v6 }
 0x297   :  { %1044 = vpow2.f32 %v471_v7  ;;  %v842_v61 = vsub.s32 %v839_v55, %v841_v56 }
 0x298   :  { %1046 = vpow2.f32 %v469_v8 }
 0x2a2   :  { %v1041_v9 = vpop.eup %1040 }
 0x2a3   :  { %v1043_v12 = vpop.eup %1042  ;;  %v552_v17 = vmul.f32 %v1041_v9, %v1378_v13  ;;  %v634_v13 = vld [vmem:[#allocation10 + $0x18] sm:$0xff] }
 0x2a4   :  { %972 = vmatpush3.msra.mxu1 %v1043_v12  ;;  %v553_v15 = vmul.f32 %v1043_v12, %v1385_v14  ;;  %v1045_v16 = vpop.eup %1044 }
 0x2a5   :  { %973 = vmatprep.subr.mxu1 %v1236_v0  ;;  %v1047_v18 = vpop.eup %1046  ;;  %v551_v19 = vmul.f32 %v1045_v16, %v1366_v11  ;;  %v638_v11 = vld [vmem:[#allocation11 + $0x18] sm:$0xff] }
 0x2a6   :  { %974 = vmatpush3.msra.mxu1 %v1041_v9  ;;  %983 = vmatpush3.msra.mxu0 %v553_v15  ;;  %v550_v14 = vmul.f32 %v1047_v18, %v1359_v10  ;;  %v637_v10 = vld [vmem:[#allocation11 + $0x10] sm:$0xff] }
 0x2a7   :  { %975 = vmatprep.subr.mxu1 %v1236_v0  ;;  %984 = vmatprep.subr.mxu0 %v1236_v0 }
 0x2a8   :  { %976 = vmatpush3.msra.mxu1 %v1045_v16  ;;  %985 = vmatpush3.msra.mxu0 %v552_v17 }
 0x2a9   :  { %977 = vmatprep.subr.mxu1 %v1236_v0  ;;  %986 = vmatprep.subr.mxu0 %v1236_v0 }
 0x2aa   :  { %978 = vmatpush3.msra.mxu1 %v1047_v18  ;;  %987 = vmatpush3.msra.mxu0 %v551_v19 }
 0x2ab   :  { %980 = vmatmul.mubr.msk.f32.vlgmr.msra.gmra.mxu1 %vm141_vm1, %v132_v20  ;;  %988 = vmatprep.subr.mxu0 %v1236_v0 }
 0x2ac   :  { %989 = vmatpush3.msra.mxu0 %v550_v14  ;;  %993 = vmatprep.subr.mxu1 %v1236_v0 }
 0x2ad   :  { %991 = vmatmul.mubr.msk.f32.vlgmr.msra.gmra.mxu0 %vm141_vm1, %v132_v20  ;;  %1004 = vmatprep.subr.mxu0 %v1236_v0 }
 0x2ae   :  { %1001 = vmatprep.mubr.msk.f32.mxu1 %vm1237_vm0, %v1236_v0  ;;  %1012 = vmatprep.mubr.msk.f32.mxu0 %vm1237_vm0, %v1236_v0 }
 0x2af   :  { %994 = vmatpush3.msra.mxu1 %v638_v11  ;;  %1005 = vmatpush3.msra.mxu0 %v634_v13 }
 0x2b0   :  { %995 = vmatprep.subr.mxu1 %v1236_v0  ;;  %1006 = vmatprep.subr.mxu0 %v1236_v0 }
 0x2b1   :  { %996 = vmatpush3.msra.mxu1 %v637_v10  ;;  %1007 = vmatpush3.msra.mxu0 %v633_v21 }
 0x2b2   :  { %997 = vmatprep.subr.mxu1 %v1236_v0  ;;  %1008 = vmatprep.subr.mxu0 %v1236_v0 }
 0x2b3   :  { %1009 = vmatpush3.msra.mxu0 %v632_v26  ;;  %998 = vmatpush3.msra.mxu1 %v636_v27 }
 0x2b4   :  { %1010 = vmatprep.subr.mxu0 %v1236_v0  ;;  %999 = vmatprep.subr.mxu1 %v1236_v0 }
 0x2b5   :  { %1011 = vmatpush3.msra.mxu0 %v631_v28  ;;  %1000 = vmatpush3.msra.mxu1 %v635_v30 }
 0x2b6   :  { %1013 = vmatmul.mubr.msk.f32.vlgmr.msra.gmra.mxu0 %vm141_vm1, %v126_v29 }
 0x36b   :  { %v546_v22 = vpop.f32.mrf.mxu1 }
 0x36c   :  { %626 = vperm.xlu0 %1031, %v546_v22  }
 0x36d   :  { %v981_v23 = vpop.f32.mrf.mxu1  ;;  %v620_v24 = vpop.f32.mrf.mxu0 }
 0x36f   :  { %v992_v25 = vpop.f32.mrf.mxu0 }
 0x376   :  { %v781_v35 = vpop.f32.mrf.mxu0 }
 0x378   :  { %v1014_v36 = vpop.f32.mrf.mxu0 }
 0x3e7   :  { %v627_v32 = vpop.permute.xlu0 %626 }
 0x3e8   :  { %1048 = vrcp.f32 %v627_v32 }
 0x3f5   :  { %v1049_v33 = vpop.eup %1048 }
 0x3f6   :  { %v630_v34 = vmul.f32 %v1049_v33, %v620_v24 }
 0x3f8   :  { %1002 = vmatmul.mubr.msk.f32.vlgmr.msra.gmra.mxu1 %vm141_vm1, %v630_v34  ;;  %v835_v59 = vpack.c.bf16 %v630_v34, %v630_v34 }
 0x3fa   :  { %v843_v63 = vrot.slane %v835_v59, %v842_v61 }
 0x4b8   :  { %v708_v0 = vpop.f32.mrf.mxu1 }
 0x4b9   :  { %v782_v38 = vadd.f32 %v781_v35, %v708_v0 }
 0x4ba   :  { %v1003_v39 = vpop.f32.mrf.mxu1 }
 0x4bb   :  { %v792_v40 = vadd.f32 %v897_v37, %v782_v38 }
 0x4bd   :  { %v800_v41 = vadd.f32 %v898_v31, %v792_v40 }
 0x4bf   :  { %v899_v42 = vmul.f32 -1.442695, %v800_v41 }
 0x4c1   :  { %1050 = vpow2.f32 %v899_v42 }
 0x4ce   :  { %v1051_v43 = vpop.eup %1050 }
 0x4cf   :  { %v804_v44 = vadd.f32 1.0, %v1051_v43 }
 0x4d1   :  { %1052 = vrcp.f32 %v804_v44 }
 0x4de   :  { %v1053_v46 = vpop.eup %1052 }
 0x4df   :  { %v810_v47 = vmul.f32 %v1053_v46, %v808_v45  ;;  %v817_v57 = vsub.f32 1.0, %v1053_v46 }
 0x4e1   :  { %812 = vrot.lane.b32.xlu1 %v810_v47, %s1239_s5 }
 0x553   :  { %v813_v48 = vpop.permute.xlu1 %812 }
 0x554   :  { %v815_v49 = vadd.f32 %v813_v48, %v792_v40 }
 0x556   :  { %1054 = vtanh.f32 %v815_v49 }
 0x563   :  { %v1055_v51 = vpop.eup %1054 }
 0x564   :  { %819 = vrot.lane.b32.xlu1 %v1055_v51, %s1240_s11 }
 0x5d6   :  { %v820_v58 = vpop.permute.xlu1 %819 }
 0x5d7   :  { %v822_v60 = vmul.f32 %v820_v58, %v817_v57 }
 0x5d9   :  { %v832_v62 = vpack.c.bf16 %v822_v60, %v822_v60  ;;  %824 = vrot.lane.b32.xlu1 %v822_v60, %s1240_s11 }
 0x5db   :  { %834 = vst.msk [vmem:[#allocation13] sm:$0x3] %vm833_vm5, %v832_v62 }
 0x5dd   :  { %844 = vrot.lane.b32.xlu1 %v843_v63, %s1239_s5 }
 0x64b   :  { %v825_v1 = vpop.permute.xlu1 %824 }
 0x64c   :  { %828 = vst.msk [vmem:[#allocation14] sm:$0xf] %vm827_vm6, %v825_v1 }
 0x64d   :  { %1187 = shalt.err (!%p1184_p6)
}
 0x64e   :  { %868 = dma.vmem_to_hbm [thread:$0]  %s866_s9, 64, %s1474_s14, [#allocation15]  }
 0x64f   :  { %v845_v2 = vpop.permute.xlu1 %844  ;;  %s1196_s28 = scalar_lea.vmem %s856_s23, 32  ;;  %p1201_p8 = scmp.lt.s32.totalorder %s856_s23, %s856_s23 }
 0x650   :  { %848 = vst.msk [vmem:[#allocation13] sm:$0x3] %vm847_vm7, %v845_v2  ;;  %p1197_p7 = scmp.ne.s32.totalorder %s856_s23, %s1196_s28  ;;  %p1202_p9 = scmp.lt.s32.totalorder %s1196_s28, %s1196_s28 }
 0x652   :  { %p1203_p10 = por %p1202_p9, %p1201_p8 }
 0x654   :  { %p1204_p11 = pnand %p1203_p10, %p1197_p7 }
 0x656   :  { %1207 = shalt.err (!%p1204_p11)
}
 0x657   :  { %858 = dma.vmem_to_hbm [thread:$0]  %s856_s23, 32, %s1473_s13, [#allocation4]  }
 0x658   :  { %1224 = dma.done.wait [#allocation4], 32  }
 0x659   :  { %1225 = vsyncadd [#allocation4], 4294967264 }
 0x65a   :  { %1226 = dma.done.wait [#allocation15], 64  }
 0x65b   :  { %1227 = vsyncadd [#allocation15], 4294967232 }
 0x65c   :  { %875 = vsyncpa [#allocation3], 1 }
 0x65d   :  { %876 = vsyncpa [#allocation6], 1 }
 0x65e   :  { %877 = vsyncpa [#allocation9], 1 }
 0x65f   :  { %878 = vsyncpa [#allocation12], 1 }
 0x660   :  { %879 = vsyncpa [#allocation4], 1 }
 0x661   :  { %880 = vsyncpa [#allocation15], 1 }

</bundles_post_ra>
